<compile_context>
chip_gen: v5e
topology: v5e:2x2
jax: 0.10.0
libtpu: 0.0.40
codegen_flags: <defaults>
</compile_context>

<pallas_src>
import functools

import jax
import jax.numpy as jnp
from jax.experimental import pallas as pl
from jax.experimental.pallas import tpu as pltpu


def _activation_kernel(x_ref, o_ref, *, activation: str):
    # Stream in native dtype, compute in f32 (v5e VPU/EUP have no bf16 path),
    # cast back on store.  Purely elementwise -> VPU/EUP only.
    x = x_ref[...].astype(jnp.float32)
    if activation == "hardtanh":
        # nn.Hardtanh(0, 20): clamp(x, 0, 20)
        y = jnp.clip(x, 0.0, 20.0)
    elif activation == "relu":
        y = jnp.maximum(x, 0.0)
    elif activation == "elu":
        y = jnp.where(x > 0, x, jnp.expm1(x))
    elif activation == "leacky_relu":  # (sic) matches the torch module's key
        y = jnp.where(x > 0, x, 0.01 * x)
    elif activation == "gelu":
        # exact (erf-based) GELU, matching nn.GELU() default
        y = 0.5 * x * (1.0 + jax.lax.erf(x * 0.7071067811865476))
    else:
        raise ValueError("Unsupported activation function : {0}".format(activation))
    o_ref[...] = y.astype(o_ref.dtype)


class ConvolutionalExtractor:
    """Pallas port of kospeech ConvolutionalExtractor (activation only)."""

    # Target ~2 MiB per block buffer: big enough to amortize the ~0.35 us
    # per-grid-step overhead, small enough that 2 in-bufs + 2 out-bufs stay
    # well under the 64 MiB VMEM of a v7x TensorCore.
    _BLOCK_BYTES_TARGET = 2 * 1024 * 1024
    # Prefer the widest lane-dense last dim that divides the element count
    # (wider -> fewer rows, fully unmasked vst stores).
    _LANE_CANDIDATES = (2048, 1024, 512, 256, 128)
    _LANE_MIN = 128

    def __init__(self, activation: str = "hardtanh"):
        activation = activation.lower()
        if activation not in ("hardtanh", "relu", "elu", "leacky_relu", "gelu"):
            raise ValueError("Unsupported activation function : {0}".format(activation))
        self.activation = activation

    # ------------------------------------------------------------------ #

    def _run_slab(self, slab: jax.Array, inplace: bool = False) -> jax.Array:
        """Run the activation kernel over a lane-dense 2D slab (rows, lane)."""
        rows, lane = slab.shape
        itemsize = jnp.dtype(slab.dtype).itemsize

        # Largest multiple-of-8 row tile that keeps the block ~2 MiB.
        target_rows = max(8, (self._BLOCK_BYTES_TARGET // (lane * itemsize)) // 8 * 8)
        block_rows = rows if rows <= target_rows else target_rows
        grid = (pl.cdiv(rows, block_rows),)

        block_bytes = block_rows * lane * itemsize
        # 2 double-buffered input blocks + 2 output blocks + headroom,
        # clamped to a range that is safe on v5e (16 MiB default scoped VMEM)
        # through v7x (64 MiB physical VMEM per TC).
        vmem_limit = min(max(4 * block_bytes + (4 << 20), 16 << 20), 32 << 20)

        n_elems = rows * lane
        cost = pl.CostEstimate(
            flops=n_elems,
            transcendentals=n_elems if self.activation in ("elu", "gelu") else 0,
            bytes_accessed=2 * n_elems * itemsize,
        )

        kernel = functools.partial(_activation_kernel, activation=self.activation)

        call_kwargs = {}
        if inplace:
            # Only beneficial if the caller donates the input at the jit
            # boundary; otherwise XLA inserts a defensive copy.
            call_kwargs["input_output_aliases"] = {0: 0}

        return pl.pallas_call(
            kernel,
            out_shape=jax.ShapeDtypeStruct(slab.shape, slab.dtype),
            grid_spec=pltpu.PrefetchScalarGridSpec(
                num_scalar_prefetch=0,
                grid=grid,
                in_specs=[pl.BlockSpec((block_rows, lane), lambda i: (i, 0))],
                out_specs=pl.BlockSpec((block_rows, lane), lambda i: (i, 0)),
            ),
            compiler_params=pltpu.CompilerParams(
                dimension_semantics=("parallel",),
                vmem_limit_bytes=int(vmem_limit),
            ),
            cost_estimate=cost,
            **call_kwargs,
        )(slab)

    def apply_activation(self, x: jax.Array, inplace: bool = False) -> jax.Array:
        """Elementwise activation on an NCHW tensor via a Pallas TPU kernel."""
        orig_shape = x.shape
        n_elems = x.size

        # Fast path: element count is lane-friendly -> metadata-only reshape
        # into a lane-dense slab, no pad/slice HBM passes.
        lane = None
        for cand in self._LANE_CANDIDATES:
            if n_elems % cand == 0:
                lane = cand
                break

        if lane is not None:
            slab = x.reshape(n_elems // lane, lane)
            out = self._run_slab(slab, inplace=inplace)
            return out.reshape(orig_shape)

        # Fallback (element count not a multiple of 128): pad to 128 lanes,
        # run, slice back.  Costs extra HBM passes but only for odd shapes.
        flat = x.reshape(-1)
        padded_len = ((n_elems + self._LANE_MIN - 1) // self._LANE_MIN) * self._LANE_MIN
        flat = jnp.pad(flat, (0, padded_len - n_elems))
        slab = flat.reshape(padded_len // self._LANE_MIN, self._LANE_MIN)
        out = self._run_slab(slab, inplace=False)
        return out.reshape(-1)[:n_elems].reshape(orig_shape)

    def forward(self, *args, **kwargs):
        # Abstract in the reference module.
        raise NotImplementedError

    __call__ = apply_activation


if __name__ == "__main__":
    key = jax.random.PRNGKey(0)
    # NCHW input, small shape consistent with a conv-frontend feature map.
    x = jax.random.normal(key, (2, 4, 16, 16), dtype=jnp.float32) * 15.0

    extractor = ConvolutionalExtractor(activation="hardtanh")
    y = jax.block_until_ready(extractor(x))
    ref = jnp.clip(x, 0.0, 20.0)
    assert y.shape == x.shape and y.dtype == x.dtype
    assert jnp.allclose(y, ref, atol=1e-6), "mismatch vs reference hardtanh (f32)"

    # Native-dtype (bf16) streaming path: no wrapper upcast, I/O stays bf16.
    xb = x.astype(jnp.bfloat16)
    yb = jax.block_until_ready(extractor(xb))
    refb = jnp.clip(xb.astype(jnp.float32), 0.0, 20.0)
    assert yb.dtype == jnp.bfloat16 and yb.shape == xb.shape
    assert jnp.allclose(yb.astype(jnp.float32), refb, atol=1e-2), "mismatch (bf16)"

    # GELU on an element count not divisible by 128 exercises the fallback.
    gelu = ConvolutionalExtractor(activation="gelu")
    x2 = jax.random.normal(jax.random.PRNGKey(0), (2, 3, 7, 5), dtype=jnp.float32)
    y2 = jax.block_until_ready(gelu(x2))
    ref2 = 0.5 * x2 * (1.0 + jax.lax.erf(x2 * 0.7071067811865476))
    assert jnp.allclose(y2, ref2, atol=1e-5), "mismatch vs reference gelu"

    print("KERNEL_OK")
</pallas_src>

<mosaic_0001>
module attributes {stable_mosaic.version = 11 : i64} {
  func.func @_activation_kernel(%arg0: i32, %arg1: memref<1x2048xf32, #tpu.memory_space<vmem>>, %arg2: memref<1x2048xf32, #tpu.memory_space<vmem>>) attributes {dimension_semantics = [#tpu.dimension_semantics<parallel>], iteration_bounds = array<i64: 1>, scalar_prefetch = 0 : i64, scratch_operands = 0 : i64, tpu.core_type = #tpu.core_type<tc>, window_params = [{transform_indices = @transform_0, window_bounds = array<i64: 1, 2048>}, {transform_indices = @transform_1, window_bounds = array<i64: 1, 2048>}]} {
    %c0 = arith.constant 0 : index
    %c0_0 = arith.constant 0 : index
    %0 = vector.load %arg1[%c0, %c0_0] : memref<1x2048xf32, #tpu.memory_space<vmem>>, vector<1x2048xf32>
    %cst = arith.constant 0.000000e+00 : f32
    %cst_1 = arith.constant 2.000000e+01 : f32
    %1 = vector.broadcast %cst : f32 to vector<1x2048xf32>
    %2 = arith.maximumf %1, %0 : vector<1x2048xf32>
    %3 = vector.broadcast %cst_1 : f32 to vector<1x2048xf32>
    %4 = arith.minimumf %3, %2 : vector<1x2048xf32>
    %c0_2 = arith.constant 0 : index
    %c0_3 = arith.constant 0 : index
    %5 = vector.load %arg2[%c0_2, %c0_3] : memref<1x2048xf32, #tpu.memory_space<vmem>>, vector<1x2048xf32>
    tpu.vector_store %arg2[%c0_2, %c0_3], %4 {strides = array<i32>} : memref<1x2048xf32, #tpu.memory_space<vmem>>, vector<1x2048xf32>,
    return
  }
  func.func @transform_0(%arg0: i32) -> (i32, i32) {
    %c0_i32 = arith.constant 0 : i32
    %c0_i32_0 = arith.constant 0 : i32
    return %arg0, %c0_i32 : i32, i32
  }
  func.func @transform_1(%arg0: i32) -> (i32, i32) {
    %c0_i32 = arith.constant 0 : i32
    %c0_i32_0 = arith.constant 0 : i32
    return %arg0, %c0_i32 : i32, i32
  }
}

</mosaic_0001>

<bundles_post_ra>
// kernel: tpu_custom_call.1
= control target key start
LH: loop header
LB: loop body
LE: loop exit
PB: predicated region body
PF: predicated region fallthrough
CT: control target
= control target key end

     0   :  { %6 = vsyncpa [#allocation3], 0  ;;  %s120_s0 = inlined_call_operand.hbm [shape: f32[1,2048], index: 0, kind: input, shape index: {}]   ;;  %s121_s1 = inlined_call_operand.hbm [shape: f32[1,2048], index: 1, kind: output, shape index: {}]  }
   0x1   :  { %7 = vsyncpa [#allocation4], 0  ;;  %s13_s8 = sshll.u32 %s120_s0, 4  ;;  %s102_s9 = smov [#allocation2]   ;;  %s14_s8 = int_to_ptr.hbm [resolvable:$true] %s13_s8 }
   0x2   :  { %s15_s10 = sshll.u32 %s102_s9, 4  ;;  %s16_s10 = int_to_ptr.vmem [resolvable:$true] %s15_s10 }
   0x3   :  { %18 = dma.hbm_to_vmem [thread:$0]  %s14_s8, 256, %s16_s10, [#allocation3]  }
   0x4   :  { %98 = dma.done.wait [#allocation3], 256  }
   0x5   :  { %99 = vsyncadd [#allocation3], 4294967040  ;;  %v23_v0 = vld [vmem:[#allocation2] sm:$0xff]  ;;  %v24_v1 = vld [vmem:[#allocation2 + $0x8] sm:$0xff]  ;;  %s103_s11 = smov [#allocation5]   ;;  %s38_s15 = sshll.u32 %s121_s1, 4  ;;  %s39_s15 = int_to_ptr.hbm [resolvable:$true] %s38_s15 }
   0x6   :  { %v25_v2 = vmax.f32 %v23_v0, 0.0  ;;  %v26_v3 = vmax.f32 %v24_v1, 0.0  ;;  %s36_s12 = sshll.u32 %s103_s11, 4  ;;  %s37_s12 = int_to_ptr.vmem [resolvable:$true] %s36_s12 }
   0x8   :  { %v27_v4 = vmin.f32 %v25_v2, 20.0  ;;  %v28_v5 = vmin.f32 %v26_v3, 20.0 }
   0xa   :  { %29 = vst [vmem:[#allocation5] sm:$0xff] %v27_v4 }
   0xb   :  { %30 = vst [vmem:[#allocation5 + $0x8] sm:$0xff] %v28_v5 }
   0xc   :  { %41 = dma.vmem_to_hbm [thread:$0]  %s37_s12, 256, %s39_s15, [#allocation4]  }
   0xd   :  { %100 = dma.done.wait [#allocation4], 256  }
   0xe   :  { %101 = vsyncadd [#allocation4], 4294967040 }
   0xf   :  { %46 = vsyncpa [#allocation3], 1 }
  0x10   :  { %47 = vsyncpa [#allocation4], 1 }

</bundles_post_ra>
